<compile_context>
chip_gen: v5e
topology: v5e:2x2
jax: 0.10.0
libtpu: 0.0.40
codegen_flags: <defaults>
</compile_context>

<pallas_src>
import jax
import jax.numpy as jnp
import numpy as np
from jax.experimental import pallas as pl
from jax.experimental.pallas import tpu as pltpu

# ---- problem sizes (small, consistent with the module) ----
INPUT_DIM = 32      # must equal HIDDEN_DIM for block_num > 1 (PyTorch module requires this too)
HIDDEN_DIM = 32
BLOCK_NUM = 2
OUT_CLASS = 16
SEQ_LEN = 8

CAT = INPUT_DIM + HIDDEN_DIM          # 64: concat([x, h]) width
G4 = 4 * HIDDEN_DIM                   # 128: fused gate width (f,i,c,o)
WB_ROWS = CAT + 8                     # 72: wx rows | wh rows | bias row | zero pad (sublane aligned)
WCB_ROWS = HIDDEN_DIM + 8             # 40: wc rows | bc row | zero pad


def lstm_kernel(x_ref, wb_ref, wcb_ref, out_ref):
    H = HIDDEN_DIM

    # ---- hoist all weight reads out of the unrolled recurrence (read each ref once) ----
    wb = wb_ref[...]                               # (BLOCK_NUM, 72, 128)
    w0x = wb[0, 0:INPUT_DIM, :]                    # (32, 128)  block-0 x projection
    w0h = wb[0, INPUT_DIM:CAT, :]                  # (32, 128)  block-0 h projection
    b0 = wb[0, CAT:CAT + 1, :]                     # (1, 128)
    w_up = [wb[blk, 0:CAT, :] for blk in range(1, BLOCK_NUM)]          # fused (64,128)
    b_up = [wb[blk, CAT:CAT + 1, :] for blk in range(1, BLOCK_NUM)]    # (1,128)

    wcb = wcb_ref[...]                             # (40, 16)
    wc = wcb[0:HIDDEN_DIM, :]                      # (32, 16)
    bc = wcb[HIDDEN_DIM:HIDDEN_DIM + 1, :]         # (1, 16)

    # ---- single-tanh gate activation constants (hoisted lane masks) ----
    # sigmoid(z) = 0.5 * (1 + tanh(z / 2)) on the f/i/o lanes; cu lanes use tanh(z) directly.
    lane = jax.lax.broadcasted_iota(jnp.int32, (1, G4), 1)
    is_cu = (lane >= 2 * H) & (lane < 3 * H)
    pre = jnp.where(is_cu, 1.0, 0.5).astype(jnp.float32)    # scale before tanh
    post = pre                                              # scale after tanh
    shift = jnp.where(is_cu, 0.0, 0.5).astype(jnp.float32)  # add after tanh

    # ---- hoist block-0 input projections for ALL time steps: one (8,32)@(32,128) matmul ----
    x_all = x_ref[...]                                                   # (SEQ_LEN, 32)
    xz0 = jnp.dot(x_all, w0x, preferred_element_type=jnp.float32) + b0   # (SEQ_LEN, 128)

    # Recurrent state kept vreg-resident via Python loop carries (fully unrolled).
    hs = [jnp.zeros((1, H), jnp.float32) for _ in range(BLOCK_NUM)]
    cs = [jnp.zeros((1, H), jnp.float32) for _ in range(BLOCK_NUM)]

    def gates(z, blk):
        t = jnp.tanh(z * pre)            # single EUP pass over all 128 lanes
        g = t * post + shift             # sigmoid lanes fixed up on the VPU
        f = g[:, 0 * H:1 * H]
        i = g[:, 1 * H:2 * H]
        cu = g[:, 2 * H:3 * H]
        o = g[:, 3 * H:4 * H]
        c_new = f * cs[blk] + i * cu
        h_new = o * jnp.tanh(c_new)
        cs[blk] = c_new
        hs[blk] = h_new
        return o                          # next block consumes the output-gate activation (per module)

    x_out = None
    for t_step in range(SEQ_LEN):         # static, fully unrolled
        # block 0: x-part (and bias) precomputed; serial chain = one (1,32)@(32,128) matmul
        z0 = xz0[t_step:t_step + 1, :] + jnp.dot(hs[0], w0h,
                                                 preferred_element_type=jnp.float32)
        x = gates(z0, 0)
        # upper blocks: one fused (1,64)@(64,128) matmul on concat([x, h])
        for blk in range(1, BLOCK_NUM):
            st = jnp.concatenate([x, hs[blk]], axis=1)                   # (1, 64)
            z = jnp.dot(st, w_up[blk - 1],
                        preferred_element_type=jnp.float32) + b_up[blk - 1]
            x = gates(z, blk)
        x_out = x

    # classify last step's output + max-stabilized log-softmax
    logits = jnp.dot(x_out, wc, preferred_element_type=jnp.float32) + bc  # (1, OUT_CLASS)
    m = jnp.max(logits, axis=1, keepdims=True)
    lse = jnp.log(jnp.sum(jnp.exp(logits - m), axis=1, keepdims=True)) + m
    out_ref[...] = logits - lse


def pack_weights(wx, wh, b, wc, bc):
    """Pack per-block gate weights + biases and the classifier into two dense arrays."""
    pad_wb = jnp.zeros((BLOCK_NUM, WB_ROWS - CAT - 1, G4), jnp.float32)
    wb = jnp.concatenate([wx, wh, b, pad_wb], axis=1)              # (BLOCK_NUM, 72, 128)
    pad_wcb = jnp.zeros((WCB_ROWS - HIDDEN_DIM - 1, OUT_CLASS), jnp.float32)
    wcb = jnp.concatenate([wc, bc, pad_wcb], axis=0)               # (40, 16)
    return wb, wcb


def lstm_forward(x_seq, wb, wcb):
    # Single grid step; everything (inputs + weights, ~75 KiB) fully VMEM-resident, 3 input DMAs.
    return pl.pallas_call(
        lstm_kernel,
        out_shape=jax.ShapeDtypeStruct((1, OUT_CLASS), jnp.float32),
        grid_spec=pltpu.PrefetchScalarGridSpec(
            num_scalar_prefetch=0,
            grid=(1,),
            in_specs=[
                pl.BlockSpec(x_seq.shape, lambda i: (0, 0)),       # whole sequence, one tile
                pl.BlockSpec(wb.shape, lambda i: (0, 0, 0)),       # packed gate weights + biases
                pl.BlockSpec(wcb.shape, lambda i: (0, 0)),         # packed classifier
            ],
            out_specs=pl.BlockSpec((1, OUT_CLASS), lambda i: (0, 0)),
        ),
        compiler_params=pltpu.CompilerParams(
            dimension_semantics=("arbitrary",),   # strictly serial recurrence
        ),
    )(x_seq, wb, wcb)


def lstm_reference(x_seq, wx, wh, b, wc, bc):
    """Pure-JAX reference mirroring the PyTorch forward exactly (same random weights)."""
    H = HIDDEN_DIM
    hs = [jnp.zeros((1, H), jnp.float32) for _ in range(BLOCK_NUM)]
    cs = [jnp.zeros((1, H), jnp.float32) for _ in range(BLOCK_NUM)]
    out = None
    for t in range(x_seq.shape[0]):
        x = x_seq[t:t + 1, :]                                      # (1, INPUT_DIM)
        for blk in range(BLOCK_NUM):
            h, c = hs[blk], cs[blk]
            state = jnp.concatenate([x, h], axis=-1)               # (1, INPUT_DIM + H)
            w_full = jnp.concatenate([wx[blk], wh[blk]], axis=0)   # (INPUT_DIM + H, 4H)
            z = state @ w_full + b[blk]                            # gates f,i,c,o
            f = jax.nn.sigmoid(z[:, 0 * H:1 * H])
            i = jax.nn.sigmoid(z[:, 1 * H:2 * H])
            cu = jnp.tanh(z[:, 2 * H:3 * H])
            o = jax.nn.sigmoid(z[:, 3 * H:4 * H])
            c = f * c + i * cu
            h = o * jnp.tanh(c)
            hs[blk], cs[blk] = h, c
            x = o
        out = x
    logits = out @ wc + bc
    return jax.nn.log_softmax(logits, axis=1)


if __name__ == "__main__":
    key = jax.random.PRNGKey(0)
    kx, k1, k2, k3, k4, k5 = jax.random.split(key, 6)

    # Deterministic PyTorch-style init: U(-1/sqrt(fan_in), 1/sqrt(fan_in)).
    kg = 1.0 / np.sqrt(INPUT_DIM + HIDDEN_DIM)
    wx = jax.random.uniform(k1, (BLOCK_NUM, INPUT_DIM, G4), jnp.float32, minval=-kg, maxval=kg)
    wh = jax.random.uniform(k2, (BLOCK_NUM, HIDDEN_DIM, G4), jnp.float32, minval=-kg, maxval=kg)
    b = jax.random.uniform(k3, (BLOCK_NUM, 1, G4), jnp.float32, minval=-kg, maxval=kg)
    kc = 1.0 / np.sqrt(HIDDEN_DIM)
    wc = jax.random.uniform(k4, (HIDDEN_DIM, OUT_CLASS), jnp.float32, minval=-kc, maxval=kc)
    bc = jax.random.uniform(k5, (1, OUT_CLASS), jnp.float32, minval=-kc, maxval=kc)

    # Sequence as (SEQ_LEN, INPUT_DIM): single (8,128) tile, drop the size-1 batch dim.
    x_seq = jax.random.normal(kx, (SEQ_LEN, INPUT_DIM), jnp.float32)

    wb, wcb = pack_weights(wx, wh, b, wc, bc)

    out = jax.block_until_ready(lstm_forward(x_seq, wb, wcb))
    ref = lstm_reference(x_seq, wx, wh, b, wc, bc)

    assert out.shape == (1, OUT_CLASS)
    np.testing.assert_allclose(np.asarray(out), np.asarray(ref), rtol=1e-5, atol=1e-5)
    print("KERNEL_OK")
</pallas_src>

<mosaic_0001>
module attributes {stable_mosaic.version = 11 : i64} {
  func.func @lstm_kernel(%arg0: i32, %arg1: memref<8x32xf32, #tpu.memory_space<vmem>>, %arg2: memref<2x72x128xf32, #tpu.memory_space<vmem>>, %arg3: memref<40x16xf32, #tpu.memory_space<vmem>>, %arg4: memref<1x16xf32, #tpu.memory_space<vmem>>) attributes {dimension_semantics = [#tpu.dimension_semantics<arbitrary>], iteration_bounds = array<i64: 1>, scalar_prefetch = 0 : i64, scratch_operands = 0 : i64, tpu.core_type = #tpu.core_type<tc>, window_params = [{pipeline_mode = #tpu.pipeline_mode<synchronous>, transform_indices = @transform_0, window_bounds = array<i64: 8, 32>}, {pipeline_mode = #tpu.pipeline_mode<synchronous>, transform_indices = @transform_1, window_bounds = array<i64: 2, 72, 128>}, {pipeline_mode = #tpu.pipeline_mode<synchronous>, transform_indices = @transform_2, window_bounds = array<i64: 40, 16>}, {pipeline_mode = #tpu.pipeline_mode<synchronous>, transform_indices = @transform_3, window_bounds = array<i64: 1, 16>}]} {
    %c0 = arith.constant 0 : index
    %c0_0 = arith.constant 0 : index
    %c0_1 = arith.constant 0 : index
    %0 = vector.load %arg2[%c0, %c0_0, %c0_1] : memref<2x72x128xf32, #tpu.memory_space<vmem>>, vector<2x72x128xf32>
    %1 = vector.extract_strided_slice %0 {offsets = [0, 0, 0], sizes = [1, 32, 128], strides = [1, 1, 1]} : vector<2x72x128xf32> to vector<1x32x128xf32>
    %2 = vector.shape_cast %1 : vector<1x32x128xf32> to vector<32x128xf32>
    %3 = vector.extract_strided_slice %0 {offsets = [0, 32, 0], sizes = [1, 32, 128], strides = [1, 1, 1]} : vector<2x72x128xf32> to vector<1x32x128xf32>
    %4 = vector.shape_cast %3 : vector<1x32x128xf32> to vector<32x128xf32>
    %5 = vector.extract_strided_slice %0 {offsets = [0, 64, 0], sizes = [1, 1, 128], strides = [1, 1, 1]} : vector<2x72x128xf32> to vector<1x1x128xf32>
    %6 = vector.shape_cast %5 : vector<1x1x128xf32> to vector<1x128xf32>
    %7 = vector.extract_strided_slice %0 {offsets = [1, 0, 0], sizes = [1, 64, 128], strides = [1, 1, 1]} : vector<2x72x128xf32> to vector<1x64x128xf32>
    %8 = vector.shape_cast %7 : vector<1x64x128xf32> to vector<64x128xf32>
    %9 = vector.extract_strided_slice %0 {offsets = [1, 64, 0], sizes = [1, 1, 128], strides = [1, 1, 1]} : vector<2x72x128xf32> to vector<1x1x128xf32>
    %10 = vector.shape_cast %9 : vector<1x1x128xf32> to vector<1x128xf32>
    %c0_2 = arith.constant 0 : index
    %c0_3 = arith.constant 0 : index
    %11 = vector.load %arg3[%c0_2, %c0_3] : memref<40x16xf32, #tpu.memory_space<vmem>>, vector<40x16xf32>
    %12 = vector.extract_strided_slice %11 {offsets = [0, 0], sizes = [32, 16], strides = [1, 1]} : vector<40x16xf32> to vector<32x16xf32>
    %13 = vector.extract_strided_slice %11 {offsets = [32, 0], sizes = [1, 16], strides = [1, 1]} : vector<40x16xf32> to vector<1x16xf32>
    %14 = tpu.iota {dimensions = array<i32: 1>} : vector<1x128xi32>
    %c64_i32 = arith.constant 64 : i32
    %15 = vector.broadcast %c64_i32 : i32 to vector<1x128xi32>
    %16 = arith.cmpi sge, %14, %15 : vector<1x128xi32>
    %c96_i32 = arith.constant 96 : i32
    %17 = vector.broadcast %c96_i32 : i32 to vector<1x128xi32>
    %18 = arith.cmpi slt, %14, %17 : vector<1x128xi32>
    %19 = arith.andi %16, %18 : vector<1x128xi1>
    %cst = arith.constant 1.000000e+00 : f32
    %cst_4 = arith.constant 5.000000e-01 : f32
    %20 = vector.broadcast %cst : f32 to vector<1x128xf32>
    %21 = vector.broadcast %cst_4 : f32 to vector<1x128xf32>
    %22 = arith.select %19, %20, %21 : vector<1x128xi1>, vector<1x128xf32>
    %cst_5 = arith.constant 0.000000e+00 : f32
    %cst_6 = arith.constant 5.000000e-01 : f32
    %23 = vector.broadcast %cst_5 : f32 to vector<1x128xf32>
    %24 = vector.broadcast %cst_6 : f32 to vector<1x128xf32>
    %25 = arith.select %19, %23, %24 : vector<1x128xi1>, vector<1x128xf32>
    %c0_7 = arith.constant 0 : index
    %c0_8 = arith.constant 0 : index
    %26 = vector.load %arg1[%c0_7, %c0_8] : memref<8x32xf32, #tpu.memory_space<vmem>>, vector<8x32xf32>
    %cst_9 = arith.constant dense<0.000000e+00> : vector<8x128xf32>
    %27 = tpu.matmul %26, %2, %cst_9 {dimension_numbers = #tpu.dot_dimension_numbers<[1], [0], [0], [1], [0, 0, 1, 1], [], []>} : vector<8x32xf32>, vector<32x128xf32>, vector<8x128xf32> -> vector<8x128xf32>
    %28 = vector.broadcast %6 : vector<1x128xf32> to vector<8x128xf32>
    %29 = arith.addf %27, %28 : vector<8x128xf32>
    %cst_10 = arith.constant 0.000000e+00 : f32
    %30 = vector.broadcast %cst_10 : f32 to vector<1x32xf32>
    %cst_11 = arith.constant 0.000000e+00 : f32
    %31 = vector.broadcast %cst_11 : f32 to vector<1x32xf32>
    %cst_12 = arith.constant 0.000000e+00 : f32
    %32 = vector.broadcast %cst_12 : f32 to vector<1x32xf32>
    %cst_13 = arith.constant 0.000000e+00 : f32
    %33 = vector.broadcast %cst_13 : f32 to vector<1x32xf32>
    %34 = vector.extract_strided_slice %29 {offsets = [0, 0], sizes = [1, 128], strides = [1, 1]} : vector<8x128xf32> to vector<1x128xf32>
    %cst_14 = arith.constant dense<0.000000e+00> : vector<1x128xf32>
    %35 = tpu.matmul %30, %4, %cst_14 {dimension_numbers = #tpu.dot_dimension_numbers<[1], [0], [0], [1], [0, 0, 1, 1], [], []>} : vector<1x32xf32>, vector<32x128xf32>, vector<1x128xf32> -> vector<1x128xf32>
    %36 = arith.addf %34, %35 : vector<1x128xf32>
    %37 = arith.mulf %36, %22 : vector<1x128xf32>
    %38 = math.tanh %37 : vector<1x128xf32>
    %39 = arith.mulf %38, %22 : vector<1x128xf32>
    %40 = arith.addf %39, %25 : vector<1x128xf32>
    %41 = vector.extract_strided_slice %40 {offsets = [0, 0], sizes = [1, 32], strides = [1, 1]} : vector<1x128xf32> to vector<1x32xf32>
    %42 = vector.extract_strided_slice %40 {offsets = [0, 32], sizes = [1, 32], strides = [1, 1]} : vector<1x128xf32> to vector<1x32xf32>
    %43 = vector.extract_strided_slice %40 {offsets = [0, 64], sizes = [1, 32], strides = [1, 1]} : vector<1x128xf32> to vector<1x32xf32>
    %44 = vector.extract_strided_slice %40 {offsets = [0, 96], sizes = [1, 32], strides = [1, 1]} : vector<1x128xf32> to vector<1x32xf32>
    %45 = arith.mulf %41, %32 : vector<1x32xf32>
    %46 = arith.mulf %42, %43 : vector<1x32xf32>
    %47 = arith.addf %45, %46 : vector<1x32xf32>
    %48 = math.tanh %47 : vector<1x32xf32>
    %49 = arith.mulf %44, %48 : vector<1x32xf32>
    %50 = tpu.concatenate %44, %31 in 1 : vector<1x32xf32>, vector<1x32xf32> -> vector<1x64xf32>
    %cst_15 = arith.constant dense<0.000000e+00> : vector<1x128xf32>
    %51 = tpu.matmul %50, %8, %cst_15 {dimension_numbers = #tpu.dot_dimension_numbers<[1], [0], [0], [1], [0, 0, 1, 1], [], []>} : vector<1x64xf32>, vector<64x128xf32>, vector<1x128xf32> -> vector<1x128xf32>
    %52 = arith.addf %51, %10 : vector<1x128xf32>
    %53 = arith.mulf %52, %22 : vector<1x128xf32>
    %54 = math.tanh %53 : vector<1x128xf32>
    %55 = arith.mulf %54, %22 : vector<1x128xf32>
    %56 = arith.addf %55, %25 : vector<1x128xf32>
    %57 = vector.extract_strided_slice %56 {offsets = [0, 0], sizes = [1, 32], strides = [1, 1]} : vector<1x128xf32> to vector<1x32xf32>
    %58 = vector.extract_strided_slice %56 {offsets = [0, 32], sizes = [1, 32], strides = [1, 1]} : vector<1x128xf32> to vector<1x32xf32>
    %59 = vector.extract_strided_slice %56 {offsets = [0, 64], sizes = [1, 32], strides = [1, 1]} : vector<1x128xf32> to vector<1x32xf32>
    %60 = vector.extract_strided_slice %56 {offsets = [0, 96], sizes = [1, 32], strides = [1, 1]} : vector<1x128xf32> to vector<1x32xf32>
    %61 = arith.mulf %57, %33 : vector<1x32xf32>
    %62 = arith.mulf %58, %59 : vector<1x32xf32>
    %63 = arith.addf %61, %62 : vector<1x32xf32>
    %64 = math.tanh %63 : vector<1x32xf32>
    %65 = arith.mulf %60, %64 : vector<1x32xf32>
    %66 = vector.extract_strided_slice %29 {offsets = [1, 0], sizes = [1, 128], strides = [1, 1]} : vector<8x128xf32> to vector<1x128xf32>
    %cst_16 = arith.constant dense<0.000000e+00> : vector<1x128xf32>
    %67 = tpu.matmul %49, %4, %cst_16 {dimension_numbers = #tpu.dot_dimension_numbers<[1], [0], [0], [1], [0, 0, 1, 1], [], []>} : vector<1x32xf32>, vector<32x128xf32>, vector<1x128xf32> -> vector<1x128xf32>
    %68 = arith.addf %66, %67 : vector<1x128xf32>
    %69 = arith.mulf %68, %22 : vector<1x128xf32>
    %70 = math.tanh %69 : vector<1x128xf32>
    %71 = arith.mulf %70, %22 : vector<1x128xf32>
    %72 = arith.addf %71, %25 : vector<1x128xf32>
    %73 = vector.extract_strided_slice %72 {offsets = [0, 0], sizes = [1, 32], strides = [1, 1]} : vector<1x128xf32> to vector<1x32xf32>
    %74 = vector.extract_strided_slice %72 {offsets = [0, 32], sizes = [1, 32], strides = [1, 1]} : vector<1x128xf32> to vector<1x32xf32>
    %75 = vector.extract_strided_slice %72 {offsets = [0, 64], sizes = [1, 32], strides = [1, 1]} : vector<1x128xf32> to vector<1x32xf32>
    %76 = vector.extract_strided_slice %72 {offsets = [0, 96], sizes = [1, 32], strides = [1, 1]} : vector<1x128xf32> to vector<1x32xf32>
    %77 = arith.mulf %73, %47 : vector<1x32xf32>
    %78 = arith.mulf %74, %75 : vector<1x32xf32>
    %79 = arith.addf %77, %78 : vector<1x32xf32>
    %80 = math.tanh %79 : vector<1x32xf32>
    %81 = arith.mulf %76, %80 : vector<1x32xf32>
    %82 = tpu.concatenate %76, %65 in 1 : vector<1x32xf32>, vector<1x32xf32> -> vector<1x64xf32>
    %cst_17 = arith.constant dense<0.000000e+00> : vector<1x128xf32>
    %83 = tpu.matmul %82, %8, %cst_17 {dimension_numbers = #tpu.dot_dimension_numbers<[1], [0], [0], [1], [0, 0, 1, 1], [], []>} : vector<1x64xf32>, vector<64x128xf32>, vector<1x128xf32> -> vector<1x128xf32>
    %84 = arith.addf %83, %10 : vector<1x128xf32>
    %85 = arith.mulf %84, %22 : vector<1x128xf32>
    %86 = math.tanh %85 : vector<1x128xf32>
    %87 = arith.mulf %86, %22 : vector<1x128xf32>
    %88 = arith.addf %87, %25 : vector<1x128xf32>
    %89 = vector.extract_strided_slice %88 {offsets = [0, 0], sizes = [1, 32], strides = [1, 1]} : vector<1x128xf32> to vector<1x32xf32>
    %90 = vector.extract_strided_slice %88 {offsets = [0, 32], sizes = [1, 32], strides = [1, 1]} : vector<1x128xf32> to vector<1x32xf32>
    %91 = vector.extract_strided_slice %88 {offsets = [0, 64], sizes = [1, 32], strides = [1, 1]} : vector<1x128xf32> to vector<1x32xf32>
    %92 = vector.extract_strided_slice %88 {offsets = [0, 96], sizes = [1, 32], strides = [1, 1]} : vector<1x128xf32> to vector<1x32xf32>
    %93 = arith.mulf %89, %63 : vector<1x32xf32>
    %94 = arith.mulf %90, %91 : vector<1x32xf32>
    %95 = arith.addf %93, %94 : vector<1x32xf32>
    %96 = math.tanh %95 : vector<1x32xf32>
    %97 = arith.mulf %92, %96 : vector<1x32xf32>
    %98 = vector.extract_strided_slice %29 {offsets = [2, 0], sizes = [1, 128], strides = [1, 1]} : vector<8x128xf32> to vector<1x128xf32>
    %cst_18 = arith.constant dense<0.000000e+00> : vector<1x128xf32>
    %99 = tpu.matmul %81, %4, %cst_18 {dimension_numbers = #tpu.dot_dimension_numbers<[1], [0], [0], [1], [0, 0, 1, 1], [], []>} : vector<1x32xf32>, vector<32x128xf32>, vector<1x128xf32> -> vector<1x128xf32>
    %100 = arith.addf %98, %99 : vector<1x128xf32>
    %101 = arith.mulf %100, %22 : vector<1x128xf32>
    %102 = math.tanh %101 : vector<1x128xf32>
    %103 = arith.mulf %102, %22 : vector<1x128xf32>
    %104 = arith.addf %103, %25 : vector<1x128xf32>
    %105 = vector.extract_strided_slice %104 {offsets = [0, 0], sizes = [1, 32], strides = [1, 1]} : vector<1x128xf32> to vector<1x32xf32>
    %106 = vector.extract_strided_slice %104 {offsets = [0, 32], sizes = [1, 32], strides = [1, 1]} : vector<1x128xf32> to vector<1x32xf32>
    %107 = vector.extract_strided_slice %104 {offsets = [0, 64], sizes = [1, 32], strides = [1, 1]} : vector<1x128xf32> to vector<1x32xf32>
    %108 = vector.extract_strided_slice %104 {offsets = [0, 96], sizes = [1, 32], strides = [1, 1]} : vector<1x128xf32> to vector<1x32xf32>
    %109 = arith.mulf %105, %79 : vector<1x32xf32>
    %110 = arith.mulf %106, %107 : vector<1x32xf32>
    %111 = arith.addf %109, %110 : vector<1x32xf32>
    %112 = math.tanh %111 : vector<1x32xf32>
    %113 = arith.mulf %108, %112 : vector<1x32xf32>
    %114 = tpu.concatenate %108, %97 in 1 : vector<1x32xf32>, vector<1x32xf32> -> vector<1x64xf32>
    %cst_19 = arith.constant dense<0.000000e+00> : vector<1x128xf32>
    %115 = tpu.matmul %114, %8, %cst_19 {dimension_numbers = #tpu.dot_dimension_numbers<[1], [0], [0], [1], [0, 0, 1, 1], [], []>} : vector<1x64xf32>, vector<64x128xf32>, vector<1x128xf32> -> vector<1x128xf32>
    %116 = arith.addf %115, %10 : vector<1x128xf32>
    %117 = arith.mulf %116, %22 : vector<1x128xf32>
    %118 = math.tanh %117 : vector<1x128xf32>
    %119 = arith.mulf %118, %22 : vector<1x128xf32>
    %120 = arith.addf %119, %25 : vector<1x128xf32>
    %121 = vector.extract_strided_slice %120 {offsets = [0, 0], sizes = [1, 32], strides = [1, 1]} : vector<1x128xf32> to vector<1x32xf32>
    %122 = vector.extract_strided_slice %120 {offsets = [0, 32], sizes = [1, 32], strides = [1, 1]} : vector<1x128xf32> to vector<1x32xf32>
    %123 = vector.extract_strided_slice %120 {offsets = [0, 64], sizes = [1, 32], strides = [1, 1]} : vector<1x128xf32> to vector<1x32xf32>
    %124 = vector.extract_strided_slice %120 {offsets = [0, 96], sizes = [1, 32], strides = [1, 1]} : vector<1x128xf32> to vector<1x32xf32>
    %125 = arith.mulf %121, %95 : vector<1x32xf32>
    %126 = arith.mulf %122, %123 : vector<1x32xf32>
    %127 = arith.addf %125, %126 : vector<1x32xf32>
    %128 = math.tanh %127 : vector<1x32xf32>
    %129 = arith.mulf %124, %128 : vector<1x32xf32>
    %130 = vector.extract_strided_slice %29 {offsets = [3, 0], sizes = [1, 128], strides = [1, 1]} : vector<8x128xf32> to vector<1x128xf32>
    %cst_20 = arith.constant dense<0.000000e+00> : vector<1x128xf32>
    %131 = tpu.matmul %113, %4, %cst_20 {dimension_numbers = #tpu.dot_dimension_numbers<[1], [0], [0], [1], [0, 0, 1, 1], [], []>} : vector<1x32xf32>, vector<32x128xf32>, vector<1x128xf32> -> vector<1x128xf32>
    %132 = arith.addf %130, %131 : vector<1x128xf32>
    %133 = arith.mulf %132, %22 : vector<1x128xf32>
    %134 = math.tanh %133 : vector<1x128xf32>
    %135 = arith.mulf %134, %22 : vector<1x128xf32>
    %136 = arith.addf %135, %25 : vector<1x128xf32>
    %137 = vector.extract_strided_slice %136 {offsets = [0, 0], sizes = [1, 32], strides = [1, 1]} : vector<1x128xf32> to vector<1x32xf32>
    %138 = vector.extract_strided_slice %136 {offsets = [0, 32], sizes = [1, 32], strides = [1, 1]} : vector<1x128xf32> to vector<1x32xf32>
    %139 = vector.extract_strided_slice %136 {offsets = [0, 64], sizes = [1, 32], strides = [1, 1]} : vector<1x128xf32> to vector<1x32xf32>
    %140 = vector.extract_strided_slice %136 {offsets = [0, 96], sizes = [1, 32], strides = [1, 1]} : vector<1x128xf32> to vector<1x32xf32>
    %141 = arith.mulf %137, %111 : vector<1x32xf32>
    %142 = arith.mulf %138, %139 : vector<1x32xf32>
    %143 = arith.addf %141, %142 : vector<1x32xf32>
    %144 = math.tanh %143 : vector<1x32xf32>
    %145 = arith.mulf %140, %144 : vector<1x32xf32>
    %146 = tpu.concatenate %140, %129 in 1 : vector<1x32xf32>, vector<1x32xf32> -> vector<1x64xf32>
    %cst_21 = arith.constant dense<0.000000e+00> : vector<1x128xf32>
    %147 = tpu.matmul %146, %8, %cst_21 {dimension_numbers = #tpu.dot_dimension_numbers<[1], [0], [0], [1], [0, 0, 1, 1], [], []>} : vector<1x64xf32>, vector<64x128xf32>, vector<1x128xf32> -> vector<1x128xf32>
    %148 = arith.addf %147, %10 : vector<1x128xf32>
    %149 = arith.mulf %148, %22 : vector<1x128xf32>
    %150 = math.tanh %149 : vector<1x128xf32>
    %151 = arith.mulf %150, %22 : vector<1x128xf32>
    %152 = arith.addf %151, %25 : vector<1x128xf32>
    %153 = vector.extract_strided_slice %152 {offsets = [0, 0], sizes = [1, 32], strides = [1, 1]} : vector<1x128xf32> to vector<1x32xf32>
    %154 = vector.extract_strided_slice %152 {offsets = [0, 32], sizes = [1, 32], strides = [1, 1]} : vector<1x128xf32> to vector<1x32xf32>
    %155 = vector.extract_strided_slice %152 {offsets = [0, 64], sizes = [1, 32], strides = [1, 1]} : vector<1x128xf32> to vector<1x32xf32>
    %156 = vector.extract_strided_slice %152 {offsets = [0, 96], sizes = [1, 32], strides = [1, 1]} : vector<1x128xf32> to vector<1x32xf32>
    %157 = arith.mulf %153, %127 : vector<1x32xf32>
    %158 = arith.mulf %154, %155 : vector<1x32xf32>
    %159 = arith.addf %157, %158 : vector<1x32xf32>
    %160 = math.tanh %159 : vector<1x32xf32>
    %161 = arith.mulf %156, %160 : vector<1x32xf32>
    %162 = vector.extract_strided_slice %29 {offsets = [4, 0], sizes = [1, 128], strides = [1, 1]} : vector<8x128xf32> to vector<1x128xf32>
    %cst_22 = arith.constant dense<0.000000e+00> : vector<1x128xf32>
    %163 = tpu.matmul %145, %4, %cst_22 {dimension_numbers = #tpu.dot_dimension_numbers<[1], [0], [0], [1], [0, 0, 1, 1], [], []>} : vector<1x32xf32>, vector<32x128xf32>, vector<1x128xf32> -> vector<1x128xf32>
    %164 = arith.addf %162, %163 : vector<1x128xf32>
    %165 = arith.mulf %164, %22 : vector<1x128xf32>
    %166 = math.tanh %165 : vector<1x128xf32>
    %167 = arith.mulf %166, %22 : vector<1x128xf32>
    %168 = arith.addf %167, %25 : vector<1x128xf32>
    %169 = vector.extract_strided_slice %168 {offsets = [0, 0], sizes = [1, 32], strides = [1, 1]} : vector<1x128xf32> to vector<1x32xf32>
    %170 = vector.extract_strided_slice %168 {offsets = [0, 32], sizes = [1, 32], strides = [1, 1]} : vector<1x128xf32> to vector<1x32xf32>
    %171 = vector.extract_strided_slice %168 {offsets = [0, 64], sizes = [1, 32], strides = [1, 1]} : vector<1x128xf32> to vector<1x32xf32>
    %172 = vector.extract_strided_slice %168 {offsets = [0, 96], sizes = [1, 32], strides = [1, 1]} : vector<1x128xf32> to vector<1x32xf32>
    %173 = arith.mulf %169, %143 : vector<1x32xf32>
    %174 = arith.mulf %170, %171 : vector<1x32xf32>
    %175 = arith.addf %173, %174 : vector<1x32xf32>
    %176 = math.tanh %175 : vector<1x32xf32>
    %177 = arith.mulf %172, %176 : vector<1x32xf32>
    %178 = tpu.concatenate %172, %161 in 1 : vector<1x32xf32>, vector<1x32xf32> -> vector<1x64xf32>
    %cst_23 = arith.constant dense<0.000000e+00> : vector<1x128xf32>
    %179 = tpu.matmul %178, %8, %cst_23 {dimension_numbers = #tpu.dot_dimension_numbers<[1], [0], [0], [1], [0, 0, 1, 1], [], []>} : vector<1x64xf32>, vector<64x128xf32>, vector<1x128xf32> -> vector<1x128xf32>
    %180 = arith.addf %179, %10 : vector<1x128xf32>
    %181 = arith.mulf %180, %22 : vector<1x128xf32>
    %182 = math.tanh %181 : vector<1x128xf32>
    %183 = arith.mulf %182, %22 : vector<1x128xf32>
    %184 = arith.addf %183, %25 : vector<1x128xf32>
    %185 = vector.extract_strided_slice %184 {offsets = [0, 0], sizes = [1, 32], strides = [1, 1]} : vector<1x128xf32> to vector<1x32xf32>
    %186 = vector.extract_strided_slice %184 {offsets = [0, 32], sizes = [1, 32], strides = [1, 1]} : vector<1x128xf32> to vector<1x32xf32>
    %187 = vector.extract_strided_slice %184 {offsets = [0, 64], sizes = [1, 32], strides = [1, 1]} : vector<1x128xf32> to vector<1x32xf32>
    %188 = vector.extract_strided_slice %184 {offsets = [0, 96], sizes = [1, 32], strides = [1, 1]} : vector<1x128xf32> to vector<1x32xf32>
    %189 = arith.mulf %185, %159 : vector<1x32xf32>
    %190 = arith.mulf %186, %187 : vector<1x32xf32>
    %191 = arith.addf %189, %190 : vector<1x32xf32>
    %192 = math.tanh %191 : vector<1x32xf32>
    %193 = arith.mulf %188, %192 : vector<1x32xf32>
    %194 = vector.extract_strided_slice %29 {offsets = [5, 0], sizes = [1, 128], strides = [1, 1]} : vector<8x128xf32> to vector<1x128xf32>
    %cst_24 = arith.constant dense<0.000000e+00> : vector<1x128xf32>
    %195 = tpu.matmul %177, %4, %cst_24 {dimension_numbers = #tpu.dot_dimension_numbers<[1], [0], [0], [1], [0, 0, 1, 1], [], []>} : vector<1x32xf32>, vector<32x128xf32>, vector<1x128xf32> -> vector<1x128xf32>
    %196 = arith.addf %194, %195 : vector<1x128xf32>
    %197 = arith.mulf %196, %22 : vector<1x128xf32>
    %198 = math.tanh %197 : vector<1x128xf32>
    %199 = arith.mulf %198, %22 : vector<1x128xf32>
    %200 = arith.addf %199, %25 : vector<1x128xf32>
    %201 = vector.extract_strided_slice %200 {offsets = [0, 0], sizes = [1, 32], strides = [1, 1]} : vector<1x128xf32> to vector<1x32xf32>
    %202 = vector.extract_strided_slice %200 {offsets = [0, 32], sizes = [1, 32], strides = [1, 1]} : vector<1x128xf32> to vector<1x32xf32>
    %203 = vector.extract_strided_slice %200 {offsets = [0, 64], sizes = [1, 32], strides = [1, 1]} : vector<1x128xf32> to vector<1x32xf32>
    %204 = vector.extract_strided_slice %200 {offsets = [0, 96], sizes = [1, 32], strides = [1, 1]} : vector<1x128xf32> to vector<1x32xf32>
    %205 = arith.mulf %201, %175 : vector<1x32xf32>
    %206 = arith.mulf %202, %203 : vector<1x32xf32>
    %207 = arith.addf %205, %206 : vector<1x32xf32>
    %208 = math.tanh %207 : vector<1x32xf32>
    %209 = arith.mulf %204, %208 : vector<1x32xf32>
    %210 = tpu.concatenate %204, %193 in 1 : vector<1x32xf32>, vector<1x32xf32> -> vector<1x64xf32>
    %cst_25 = arith.constant dense<0.000000e+00> : vector<1x128xf32>
    %211 = tpu.matmul %210, %8, %cst_25 {dimension_numbers = #tpu.dot_dimension_numbers<[1], [0], [0], [1], [0, 0, 1, 1], [], []>} : vector<1x64xf32>, vector<64x128xf32>, vector<1x128xf32> -> vector<1x128xf32>
    %212 = arith.addf %211, %10 : vector<1x128xf32>
    %213 = arith.mulf %212, %22 : vector<1x128xf32>
    %214 = math.tanh %213 : vector<1x128xf32>
    %215 = arith.mulf %214, %22 : vector<1x128xf32>
    %216 = arith.addf %215, %25 : vector<1x128xf32>
    %217 = vector.extract_strided_slice %216 {offsets = [0, 0], sizes = [1, 32], strides = [1, 1]} : vector<1x128xf32> to vector<1x32xf32>
    %218 = vector.extract_strided_slice %216 {offsets = [0, 32], sizes = [1, 32], strides = [1, 1]} : vector<1x128xf32> to vector<1x32xf32>
    %219 = vector.extract_strided_slice %216 {offsets = [0, 64], sizes = [1, 32], strides = [1, 1]} : vector<1x128xf32> to vector<1x32xf32>
    %220 = vector.extract_strided_slice %216 {offsets = [0, 96], sizes = [1, 32], strides = [1, 1]} : vector<1x128xf32> to vector<1x32xf32>
    %221 = arith.mulf %217, %191 : vector<1x32xf32>
    %222 = arith.mulf %218, %219 : vector<1x32xf32>
    %223 = arith.addf %221, %222 : vector<1x32xf32>
    %224 = math.tanh %223 : vector<1x32xf32>
    %225 = arith.mulf %220, %224 : vector<1x32xf32>
    %226 = vector.extract_strided_slice %29 {offsets = [6, 0], sizes = [1, 128], strides = [1, 1]} : vector<8x128xf32> to vector<1x128xf32>
    %cst_26 = arith.constant dense<0.000000e+00> : vector<1x128xf32>
    %227 = tpu.matmul %209, %4, %cst_26 {dimension_numbers = #tpu.dot_dimension_numbers<[1], [0], [0], [1], [0, 0, 1, 1], [], []>} : vector<1x32xf32>, vector<32x128xf32>, vector<1x128xf32> -> vector<1x128xf32>
    %228 = arith.addf %226, %227 : vector<1x128xf32>
    %229 = arith.mulf %228, %22 : vector<1x128xf32>
    %230 = math.tanh %229 : vector<1x128xf32>
    %231 = arith.mulf %230, %22 : vector<1x128xf32>
    %232 = arith.addf %231, %25 : vector<1x128xf32>
    %233 = vector.extract_strided_slice %232 {offsets = [0, 0], sizes = [1, 32], strides = [1, 1]} : vector<1x128xf32> to vector<1x32xf32>
    %234 = vector.extract_strided_slice %232 {offsets = [0, 32], sizes = [1, 32], strides = [1, 1]} : vector<1x128xf32> to vector<1x32xf32>
    %235 = vector.extract_strided_slice %232 {offsets = [0, 64], sizes = [1, 32], strides = [1, 1]} : vector<1x128xf32> to vector<1x32xf32>
    %236 = vector.extract_strided_slice %232 {offsets = [0, 96], sizes = [1, 32], strides = [1, 1]} : vector<1x128xf32> to vector<1x32xf32>
    %237 = arith.mulf %233, %207 : vector<1x32xf32>
    %238 = arith.mulf %234, %235 : vector<1x32xf32>
    %239 = arith.addf %237, %238 : vector<1x32xf32>
    %240 = math.tanh %239 : vector<1x32xf32>
    %241 = arith.mulf %236, %240 : vector<1x32xf32>
    %242 = tpu.concatenate %236, %225 in 1 : vector<1x32xf32>, vector<1x32xf32> -> vector<1x64xf32>
    %cst_27 = arith.constant dense<0.000000e+00> : vector<1x128xf32>
    %243 = tpu.matmul %242, %8, %cst_27 {dimension_numbers = #tpu.dot_dimension_numbers<[1], [0], [0], [1], [0, 0, 1, 1], [], []>} : vector<1x64xf32>, vector<64x128xf32>, vector<1x128xf32> -> vector<1x128xf32>
    %244 = arith.addf %243, %10 : vector<1x128xf32>
    %245 = arith.mulf %244, %22 : vector<1x128xf32>
    %246 = math.tanh %245 : vector<1x128xf32>
    %247 = arith.mulf %246, %22 : vector<1x128xf32>
    %248 = arith.addf %247, %25 : vector<1x128xf32>
    %249 = vector.extract_strided_slice %248 {offsets = [0, 0], sizes = [1, 32], strides = [1, 1]} : vector<1x128xf32> to vector<1x32xf32>
    %250 = vector.extract_strided_slice %248 {offsets = [0, 32], sizes = [1, 32], strides = [1, 1]} : vector<1x128xf32> to vector<1x32xf32>
    %251 = vector.extract_strided_slice %248 {offsets = [0, 64], sizes = [1, 32], strides = [1, 1]} : vector<1x128xf32> to vector<1x32xf32>
    %252 = vector.extract_strided_slice %248 {offsets = [0, 96], sizes = [1, 32], strides = [1, 1]} : vector<1x128xf32> to vector<1x32xf32>
    %253 = arith.mulf %249, %223 : vector<1x32xf32>
    %254 = arith.mulf %250, %251 : vector<1x32xf32>
    %255 = arith.addf %253, %254 : vector<1x32xf32>
    %256 = math.tanh %255 : vector<1x32xf32>
    %257 = arith.mulf %252, %256 : vector<1x32xf32>
    %258 = vector.extract_strided_slice %29 {offsets = [7, 0], sizes = [1, 128], strides = [1, 1]} : vector<8x128xf32> to vector<1x128xf32>
    %cst_28 = arith.constant dense<0.000000e+00> : vector<1x128xf32>
    %259 = tpu.matmul %241, %4, %cst_28 {dimension_numbers = #tpu.dot_dimension_numbers<[1], [0], [0], [1], [0, 0, 1, 1], [], []>} : vector<1x32xf32>, vector<32x128xf32>, vector<1x128xf32> -> vector<1x128xf32>
    %260 = arith.addf %258, %259 : vector<1x128xf32>
    %261 = arith.mulf %260, %22 : vector<1x128xf32>
    %262 = math.tanh %261 : vector<1x128xf32>
    %263 = arith.mulf %262, %22 : vector<1x128xf32>
    %264 = arith.addf %263, %25 : vector<1x128xf32>
    %265 = vector.extract_strided_slice %264 {offsets = [0, 96], sizes = [1, 32], strides = [1, 1]} : vector<1x128xf32> to vector<1x32xf32>
    %266 = tpu.concatenate %265, %257 in 1 : vector<1x32xf32>, vector<1x32xf32> -> vector<1x64xf32>
    %cst_29 = arith.constant dense<0.000000e+00> : vector<1x128xf32>
    %267 = tpu.matmul %266, %8, %cst_29 {dimension_numbers = #tpu.dot_dimension_numbers<[1], [0], [0], [1], [0, 0, 1, 1], [], []>} : vector<1x64xf32>, vector<64x128xf32>, vector<1x128xf32> -> vector<1x128xf32>
    %268 = arith.addf %267, %10 : vector<1x128xf32>
    %269 = arith.mulf %268, %22 : vector<1x128xf32>
    %270 = math.tanh %269 : vector<1x128xf32>
    %271 = arith.mulf %270, %22 : vector<1x128xf32>
    %272 = arith.addf %271, %25 : vector<1x128xf32>
    %273 = vector.extract_strided_slice %272 {offsets = [0, 96], sizes = [1, 32], strides = [1, 1]} : vector<1x128xf32> to vector<1x32xf32>
    %cst_30 = arith.constant dense<0.000000e+00> : vector<1x16xf32>
    %274 = tpu.matmul %273, %12, %cst_30 {dimension_numbers = #tpu.dot_dimension_numbers<[1], [0], [0], [1], [0, 0, 1, 1], [], []>} : vector<1x32xf32>, vector<32x16xf32>, vector<1x16xf32> -> vector<1x16xf32>
    %275 = arith.addf %274, %13 : vector<1x16xf32>
    %cst_31 = arith.constant dense<0xFF800000> : vector<1xf32>
    %276 = vector.multi_reduction <maximumf>, %275, %cst_31 [1] : vector<1x16xf32> to vector<1xf32>
    %277 = vector.shape_cast %276 : vector<1xf32> to vector<1x1xf32>
    %278 = vector.broadcast %277 : vector<1x1xf32> to vector<1x16xf32>
    %279 = arith.subf %275, %278 : vector<1x16xf32>
    %280 = math.exp %279 : vector<1x16xf32>
    %cst_32 = arith.constant dense<0.000000e+00> : vector<1xf32>
    %281 = vector.multi_reduction <add>, %280, %cst_32 [1] : vector<1x16xf32> to vector<1xf32>
    %282 = vector.shape_cast %281 : vector<1xf32> to vector<1x1xf32>
    %283 = math.log %282 : vector<1x1xf32>
    %284 = arith.addf %283, %277 : vector<1x1xf32>
    %285 = vector.broadcast %284 : vector<1x1xf32> to vector<1x16xf32>
    %286 = arith.subf %275, %285 : vector<1x16xf32>
    %c0_33 = arith.constant 0 : index
    %c0_34 = arith.constant 0 : index
    %287 = vector.load %arg4[%c0_33, %c0_34] : memref<1x16xf32, #tpu.memory_space<vmem>>, vector<1x16xf32>
    tpu.vector_store %arg4[%c0_33, %c0_34], %286 {strides = array<i32>} : memref<1x16xf32, #tpu.memory_space<vmem>>, vector<1x16xf32>,
    return
  }
  func.func @transform_0(%arg0: i32) -> (i32, i32) {
    %c0_i32 = arith.constant 0 : i32
    %c0_i32_0 = arith.constant 0 : i32
    %c0_i32_1 = arith.constant 0 : i32
    return %c0_i32, %c0_i32_0 : i32, i32
  }
  func.func @transform_1(%arg0: i32) -> (i32, i32, i32) {
    %c0_i32 = arith.constant 0 : i32
    %c0_i32_0 = arith.constant 0 : i32
    %c0_i32_1 = arith.constant 0 : i32
    %c0_i32_2 = arith.constant 0 : i32
    return %c0_i32, %c0_i32_0, %c0_i32_1 : i32, i32, i32
  }
  func.func @transform_2(%arg0: i32) -> (i32, i32) {
    %c0_i32 = arith.constant 0 : i32
    %c0_i32_0 = arith.constant 0 : i32
    %c0_i32_1 = arith.constant 0 : i32
    return %c0_i32, %c0_i32_0 : i32, i32
  }
  func.func @transform_3(%arg0: i32) -> (i32, i32) {
    %c0_i32 = arith.constant 0 : i32
    %c0_i32_0 = arith.constant 0 : i32
    %c0_i32_1 = arith.constant 0 : i32
    return %c0_i32, %c0_i32_0 : i32, i32
  }
}

</mosaic_0001>

<bundles_post_ra>
// kernel: tpu_custom_call.1
= control target key start
LH: loop header
LB: loop body
LE: loop exit
PB: predicated region body
PF: predicated region fallthrough
CT: control target
= control target key end

     0   :  { %8 = vsyncpa [#allocation3], 0  ;;  %s1461_s0 = inlined_call_operand.vmem [shape: f32[8,32], index: 0, kind: input, shape index: {}]   ;;  %s1462_s1 = inlined_call_operand.hbm [shape: f32[2,72,128], index: 1, kind: input, shape index: {}]   ;;  %s1463_s2 = inlined_call_operand.vmem [shape: f32[40,16], index: 2, kind: input, shape index: {}]   ;;  %s1464_s3 = inlined_call_operand.hbm [shape: f32[1,16], index: 3, kind: output, shape index: {}]  }
   0x1   :  { %9 = vsyncpa [#allocation4], 0  ;;  %s16_s14 = sshll.u32 %s1462_s1, 4  ;;  %s1099_s15 = smov [#allocation2]   ;;  %s17_s14 = int_to_ptr.hbm [resolvable:$true] %s16_s14 }
   0x2   :  { %s18_s16 = sshll.u32 %s1099_s15, 4  ;;  %s1100_s17 = smov 128   ;;  %s19_s16 = int_to_ptr.vmem [resolvable:$true] %s18_s16 }
   0x3   :  { %s1101_s18 = smov 8  }
   0x4   :  { %24 = dma.hbm_to_vmem [thread:$0]  %s17_s14, 2304, %s19_s16, [#allocation3], %s1100_s17, %s1100_s17, %s1101_s18  }
   0x5   :  { %1095 = dma.done.wait [#allocation3], 2304  }
   0x6   :  { %1096 = vsyncadd [#allocation3], 4294964992  ;;  %v34_v0 = vld [vmem:[#allocation2 + $0x18] sm:$0xff]  ;;  %v33_v1 = vld [vmem:[#allocation2 + $0x10] sm:$0xff]  ;;  %vm63_vm0 = vcmask 261120   ;;  %v1102_v9 = vmov 0.0   ;;  %v54_v10 = vlaneseq }
   0x7   :  { %v1131_v2 = vld [vmem:[#allocation2 + $0x38] sm:$0xff]  ;;  %79 = vmatpush.msra.mxu0 %v34_v0  ;;  %v1134_v3 = vld [vmem:[#allocation2 + $0x30] sm:$0xff]  ;;  %v32_v4 = vld [vmem:[#allocation2 + $0x8] sm:$0xff]  ;;  %v1103_v23 = vmov 0.5   ;;  %s1105_s20 = smov 96   ;;  %vm136_vm4 = vcmask 523264  }
   0x8   :  { %102 = vmatpush.msra.mxu1 %v1131_v2  ;;  %v1136_v5 = vld [vmem:[#allocation2 + $0x28] sm:$0xff]  ;;  %198 = vmatpush.msra.mxu3 %v1131_v2  ;;  %v31_v6 = vld [vmem:[#allocation2] sm:$0xff]  ;;  %v55_v11 = vand.u32 127, %v54_v10  ;;  %v1161_v14 = vld [vmem:[#allocation2 + $0x78] sm:$0xff]  ;;  %s1106_s21 = smov 64   ;;  %vm925_vm5 = vcmask 122880  }
   0x9   :  { %80 = vmatpush.msra.mxu0 %v33_v1  ;;  %v1140_v7 = vld [vmem:[#allocation2 + $0x20] sm:$0xff]  ;;  %v1165_v15 = vld [vmem:[#allocation2 + $0x70] sm:$0xff]  ;;  %v1170_v17 = vld [vmem:[#allocation2 + $0x68] sm:$0xff]  ;;  %s1107_s5 = smov [#allocation5]   ;;  %s947_s8 = sshll.u32 %s1464_s3, 4  ;;  %s948_s8 = int_to_ptr.hbm [resolvable:$true] %s947_s8 }
   0xa   :  { %103 = vmatpush.msra.mxu1 %v1134_v3  ;;  %199 = vmatpush.msra.mxu3 %v1134_v3  ;;  %v61_v8 = vld [vmem:[%s1461_s0] sm:$0xff]  ;;  %vm56_vm1 = vcmp.ge.s32.totalorder %v55_v11, 64  ;;  %vm57_vm2 = vcmp.lt.s32.totalorder %v55_v11, 96  ;;  %v1190_v25 = vld [vmem:[#allocation2 + $0x58] sm:$0xff]  ;;  %v1196_v27 = vld [vmem:[#allocation2 + $0x50] sm:$0xff]  ;;  %s1104_s0 = smov 32  }
   0xb   :  { %81 = vmatpush.msra.mxu0 %v32_v4  ;;  %v39_v12 = vld [vmem:[#allocation2 + $0x40] sm:$0xff]  ;;  %vm1173_vm3 = vmand %vm56_vm1, %vm57_vm2  ;;  %v1214_v33 = vld [vmem:[#allocation2 + $0x48] sm:$0xff] }
   0xc   :  { %104 = vmatpush.msra.mxu1 %v1136_v5  ;;  %200 = vmatpush.msra.mxu3 %v1136_v5  ;;  %v1159_v13 = vld [vmem:[#allocation2 + $0x80] sm:$0xff]  ;;  %v62_v16 = vperm.slane %v39_v12, 0  ;;  %v1188_v24 = vsel %vm1173_vm3, 1.0, %v1103_v23  ;;  %v1208_v30 = vsel %vm1173_vm3, 0.0, %v1103_v23  ;;  %v1239_v42 = vld [vmem:[#allocation2 + $0x88] sm:$0xff] }
   0xd   :  { %82 = vmatpush.msra.mxu0 %v31_v6  ;;  %148 = vmatpush.msra.mxu2 %v1159_v13  ;;  %v1179_v21 = vld [vmem:[#allocation2 + $0x60] sm:$0xff] }
   0xe   :  { %105 = vmatpush.msra.mxu1 %v1140_v7  ;;  %957 = vmatmul.msk.f32.vlgmr.msra.gmra.mxu0 %vm63_vm0, %v61_v8 }
   0xf   :  { %106 = vmatmul.f32.vlgmr.msra.gmra.mxu1 %v1102_v9  ;;  %201 = vmatpush.msra.mxu3 %v1140_v7 }
  0x10   :  { %306 = vmatpush.msrb.mxu1 %v1131_v2  ;;  %255 = vmatpush.msrb.mxu0 %v1159_v13 }
  0x11   :  { %363 = vmatpush.msrb.mxu3 %v1159_v13  ;;  %149 = vmatpush.msra.mxu2 %v1161_v14 }
  0x12   :  { %307 = vmatpush.msrb.mxu1 %v1134_v3  ;;  %256 = vmatpush.msrb.mxu0 %v1161_v14 }
  0x13   :  { %364 = vmatpush.msrb.mxu3 %v1161_v14  ;;  %150 = vmatpush.msra.mxu2 %v1165_v15 }
  0x14   :  { %308 = vmatpush.msrb.mxu1 %v1136_v5  ;;  %257 = vmatpush.msrb.mxu0 %v1165_v15 }
  0x15   :  { %365 = vmatpush.msrb.mxu3 %v1165_v15  ;;  %151 = vmatpush.msra.mxu2 %v1170_v17 }
  0x16   :  { %309 = vmatpush.msrb.mxu1 %v1140_v7  ;;  %258 = vmatpush.msrb.mxu0 %v1170_v17 }
  0x17   :  { %366 = vmatpush.msrb.mxu3 %v1170_v17  ;;  %152 = vmatpush.msra.mxu2 %v1179_v21 }
  0x18   :  { %414 = vmatpush.msra.mxu1 %v1131_v2  ;;  %259 = vmatpush.msrb.mxu0 %v1179_v21 }
  0x19   :  { %367 = vmatpush.msrb.mxu3 %v1179_v21  ;;  %153 = vmatpush.msra.mxu2 %v1190_v25 }
  0x1a   :  { %415 = vmatpush.msra.mxu1 %v1134_v3  ;;  %260 = vmatpush.msrb.mxu0 %v1190_v25 }
  0x1b   :  { %368 = vmatpush.msrb.mxu3 %v1190_v25  ;;  %154 = vmatpush.msra.mxu2 %v1196_v27 }
  0x1c   :  { %416 = vmatpush.msra.mxu1 %v1136_v5  ;;  %261 = vmatpush.msrb.mxu0 %v1196_v27 }
  0x1d   :  { %369 = vmatpush.msrb.mxu3 %v1196_v27  ;;  %155 = vmatpush.msra.mxu2 %v1214_v33 }
  0x1e   :  { %417 = vmatpush.msra.mxu1 %v1140_v7  ;;  %262 = vmatpush.msrb.mxu0 %v1214_v33 }
  0x1f   :  { %370 = vmatpush.msrb.mxu3 %v1214_v33  ;;  %471 = vmatpush.msrb.mxu2 %v1159_v13 }
  0x20   :  { %522 = vmatpush.msra.mxu0 %v1131_v2 }
  0x21   :  { %472 = vmatpush.msrb.mxu2 %v1161_v14 }
  0x22   :  { %523 = vmatpush.msra.mxu0 %v1134_v3 }
  0x23   :  { %473 = vmatpush.msrb.mxu2 %v1165_v15 }
  0x24   :  { %524 = vmatpush.msra.mxu0 %v1136_v5 }
  0x25   :  { %474 = vmatpush.msrb.mxu2 %v1170_v17 }
  0x26   :  { %525 = vmatpush.msra.mxu0 %v1140_v7 }
  0x27   :  { %475 = vmatpush.msrb.mxu2 %v1179_v21 }
  0x29   :  { %476 = vmatpush.msrb.mxu2 %v1190_v25 }
  0x2b   :  { %477 = vmatpush.msrb.mxu2 %v1196_v27 }
  0x2d   :  { %478 = vmatpush.msrb.mxu2 %v1214_v33 }
  0x8b   :  { %v84_v19 = vpop.f32.mrf.mxu0 }
  0x8c   :  { %v107_v20 = vpop.f32.mrf.mxu1  ;;  %v1182_v22 = vadd.f32 %v84_v19, %v62_v16 }
  0x8e   :  { %v110_v26 = vadd.f32 %v107_v20, %v1182_v22 }
  0x90   :  { %v111_v28 = vmul.f32 %v110_v26, %v1188_v24 }
  0x92   :  { %983 = vtanh.f32 %v111_v28 }
  0x98   :  { %v984_v29 = vpop.eup %983 }
  0x99   :  { %v113_v31 = vmul.f32 %v984_v29, %v1188_v24 }
  0x9b   :  { %v114_v32 = vadd.f32 %v113_v31, %v1208_v30 }
  0x9d   :  { %132 = vrot.lane.b32.xlu0 %v114_v32, %s1104_s0  ;;  %v115_v38 = vmul.f32 0.0, %v114_v32 }
  0xa5   :  { %117 = vrot.lane.b32.xlu0 %v114_v32, %s1105_s20 }
 0x10f   :  { %v133_v34 = vpop.permute.xlu0 %132 }
 0x110   :  { %v135_v35 = vsel %vm63_vm0, %v133_v34, 0.0 }
 0x111   :  { %958 = vmatmul.msk.f32.vlgmr.msra.gmra.mxu2 %vm136_vm4, %v135_v35 }
 0x112   :  { %738 = vmatpush.msra.mxu2 %v1131_v2 }
 0x114   :  { %739 = vmatpush.msra.mxu2 %v1134_v3 }
 0x116   :  { %740 = vmatpush.msra.mxu2 %v1136_v5 }
 0x117   :  { %v118_v36 = vpop.permute.xlu0 %117 }
 0x118   :  { %v120_v37 = vmul.f32 %v118_v36, %v114_v32  ;;  %741 = vmatpush.msra.mxu2 %v1140_v7 }
 0x11a   :  { %122 = vrot.lane.b32.xlu1 %v120_v37, %s1105_s20 }
 0x18c   :  { %v123_v39 = vpop.permute.xlu1 %122 }
 0x18d   :  { %v125_v40 = vadd.f32 %v123_v39, %v115_v38 }
 0x18f   :  { %985 = vtanh.f32 %v125_v40  ;;  %v215_v11 = vrot.slane %v125_v40, 7 }
 0x194   :  { %v157_v43 = vpop.f32.mrf.mxu2 }
 0x195   :  { %v986_v41 = vpop.eup %985  ;;  %v158_v44 = vadd.f32 %v157_v43, %v1239_v42 }
 0x196   :  { %128 = vrot.lane.b32.xlu1 %v986_v41, %s1105_s20 }
 0x197   :  { %v160_v45 = vmul.f32 %v158_v44, %v1188_v24 }
 0x199   :  { %987 = vtanh.f32 %v160_v45 }
 0x19f   :  { %v988_v48 = vpop.eup %987 }
 0x1a0   :  { %v162_v49 = vmul.f32 %v988_v48, %v1188_v24 }
 0x1a2   :  { %v163_v50 = vadd.f32 %v162_v49, %v1208_v30 }
 0x1a4   :  { %v164_v54 = vmul.f32 0.0, %v163_v50 }
 0x208   :  { %v129_v46 = vpop.permute.xlu1 %128 }
 0x209   :  { %v131_v47 = vmul.f32 %v129_v46, %v114_v32 }
 0x20b   :  { %182 = vrot.lane.b32.xlu2 %v131_v47, %s1104_s0 }
 0x213   :  { %166 = vrot.lane.b32.xlu2 %v163_v50, %s1105_s20 }
 0x265   :  { %v183_v51 = vpop.permute.xlu2 %182 }
 0x266   :  { %959 = vmatmul.msk.f32.vlgmr.msra.gmra.mxu3 %vm63_vm0, %v183_v51 }
 0x267   :  { %630 = vmatpush.msra.mxu3 %v1131_v2 }
 0x269   :  { %631 = vmatpush.msra.mxu3 %v1134_v3 }
 0x26b   :  { %632 = vmatpush.msra.mxu3 %v1136_v5 }
 0x26d   :  { %v167_v52 = vpop.permute.xlu2 %166  ;;  %633 = vmatpush.msra.mxu3 %v1140_v7 }
 0x26e   :  { %v169_v53 = vmul.f32 %v167_v52, %v163_v50 }
 0x270   :  { %171 = vrot.lane.b32.xlu0 %v169_v53, %s1105_s20 }
 0x2e2   :  { %v172_v55 = vpop.permute.xlu0 %171 }
 0x2e3   :  { %v1253_v56 = vadd.f32 %v172_v55, %v164_v54 }
 0x2e5   :  { %989 = vtanh.f32 %v1253_v56 }
 0x2e9   :  { %v203_v57 = vpop.f32.mrf.mxu3 }
 0x2ea   :  { %v207_v58 = vrot.slane %v203_v57, 7 }
 0x2eb   :  { %v990_v59 = vpop.eup %989 }
 0x2ec   :  { %v209_v60 = vadd.f32 %v207_v58, %v1182_v22  ;;  %177 = vrot.lane.b32.xlu1 %v990_v59, %s1105_s20 }
 0x2ee   :  { %v210_v61 = vmul.f32 %v209_v60, %v1188_v24 }
 0x2f0   :  { %991 = vtanh.f32 %v210_v61 }
 0x2f6   :  { %v992_v62 = vpop.eup %991 }
 0x2f7   :  { %v212_v63 = vmul.f32 %v992_v62, %v1188_v24 }
 0x2f9   :  { %v213_v0 = vadd.f32 %v212_v63, %v1208_v30 }
 0x2fb   :  { %234 = vrot.lane.b32.xlu2 %v213_v0, %s1104_s0  ;;  %219 = vrot.lane.b32.xlu1 %v213_v0, %s1105_s20  ;;  %v217_v12 = vmul.f32 %v215_v11, %v213_v0 }
 0x355   :  { %v235_v10 = vpop.permute.xlu2 %234 }
 0x35e   :  { %v178_v1 = vpop.permute.xlu1 %177 }
 0x35f   :  { %v180_v4 = vmul.f32 %v178_v1, %v163_v50 }
 0x361   :  { %v238_v6 = vrot.slane %v180_v4, 7 }
 0x363   :  { %239 = vrot.lane.b32.xlu0 %v238_v6, %s1106_s21 }
 0x36d   :  { %v220_v8 = vpop.permute.xlu1 %219 }
 0x36e   :  { %v222_v9 = vmul.f32 %v220_v8, %v213_v0 }
 0x370   :  { %224 = vrot.lane.b32.xlu2 %v222_v9, %s1105_s20 }
 0x3ca   :  { %v225_v16 = vpop.permute.xlu2 %224 }
 0x3cb   :  { %v1265_v18 = vadd.f32 %v225_v16, %v217_v12 }
 0x3cd   :  { %993 = vtanh.f32 %v1265_v18  ;;  %v323_v60 = vrot.slane %v1265_v18, 7 }
 0x3d3   :  { %v994_v19 = vpop.eup %993 }
 0x3d4   :  { %230 = vrot.lane.b32.xlu0 %v994_v19, %s1105_s20 }
 0x3d5   :  { %v240_v20 = vpop.permute.xlu0 %239 }
 0x3d6   :  { %v242_v23 = vsel %vm63_vm0, %v235_v10, %v240_v20 }
 0x3d7   :  { %v244_v26 = vrot.slane %v242_v23, 1 }
 0x3d9   :  { %960 = vmatmul.msk.f32.vlgmr.msrb.gmra.mxu0 %vm136_vm4, %v244_v26 }
 0x3da   :  { %687 = vmatpush.msrb.mxu0 %v1159_v13 }
 0x3dc   :  { %688 = vmatpush.msrb.mxu0 %v1161_v14 }
 0x3de   :  { %689 = vmatpush.msrb.mxu0 %v1165_v15 }
 0x3e0   :  { %690 = vmatpush.msrb.mxu0 %v1170_v17 }
 0x3e2   :  { %691 = vmatpush.msrb.mxu0 %v1179_v21 }
 0x3e4   :  { %692 = vmatpush.msrb.mxu0 %v1190_v25 }
 0x3e6   :  { %693 = vmatpush.msrb.mxu0 %v1196_v27 }
 0x3e8   :  { %694 = vmatpush.msrb.mxu0 %v1214_v33 }
 0x446   :  { %v231_v28 = vpop.permute.xlu0 %230 }
 0x447   :  { %v233_v29 = vmul.f32 %v231_v28, %v213_v0 }
 0x449   :  { %v289_v31 = vrot.slane %v233_v29, 1 }
 0x44b   :  { %290 = vrot.lane.b32.xlu1 %v289_v31, %s1104_s0 }
 0x456   :  { %v264_v32 = vpop.f32.mrf.mxu0 }
 0x457   :  { %v265_v34 = vadd.f32 %v264_v32, %v1239_v42 }
 0x459   :  { %v267_v35 = vmul.f32 %v265_v34, %v1188_v24 }
 0x45b   :  { %995 = vtanh.f32 %v267_v35 }
 0x461   :  { %v996_v36 = vpop.eup %995 }
 0x462   :  { %v269_v37 = vmul.f32 %v996_v36, %v1188_v24 }
 0x464   :  { %v270_v38 = vadd.f32 %v269_v37, %v1208_v30 }
 0x466   :  { %273 = vrot.lane.b32.xlu2 %v270_v38, %s1105_s20  ;;  %v271_v43 = vmul.f32 %v270_v38, %v1253_v56 }
 0x4bd   :  { %v291_v39 = vpop.permute.xlu1 %290 }
 0x4be   :  { %961 = vmatmul.msk.f32.vlgmr.msrb.gmra.mxu1 %vm63_vm0, %v291_v39 }
 0x4bf   :  { %579 = vmatpush.msrb.mxu1 %v1159_v13 }
 0x4c0   :  { %v274_v40 = vpop.permute.xlu2 %273 }
 0x4c1   :  { %v276_v41 = vmul.f32 %v274_v40, %v270_v38  ;;  %580 = vmatpush.msrb.mxu1 %v1161_v14 }
 0x4c3   :  { %278 = vrot.lane.b32.xlu0 %v276_v41, %s1105_s20  ;;  %581 = vmatpush.msrb.mxu1 %v1165_v15 }
 0x4c5   :  { %582 = vmatpush.msrb.mxu1 %v1170_v17 }
 0x4c7   :  { %583 = vmatpush.msrb.mxu1 %v1179_v21 }
 0x4c9   :  { %584 = vmatpush.msrb.mxu1 %v1190_v25 }
 0x4cb   :  { %585 = vmatpush.msrb.mxu1 %v1196_v27 }
 0x4cd   :  { %586 = vmatpush.msrb.mxu1 %v1214_v33 }
 0x535   :  { %v279_v44 = vpop.permute.xlu0 %278 }
 0x536   :  { %v1296_v45 = vadd.f32 %v279_v44, %v271_v43 }
 0x538   :  { %997 = vtanh.f32 %v1296_v45 }
 0x53b   :  { %v311_v46 = vpop.f32.mrf.mxu1 }
 0x53c   :  { %v315_v47 = vrot.slane %v311_v46, 6 }
 0x53e   :  { %v998_v48 = vpop.eup %997  ;;  %v317_v49 = vadd.f32 %v315_v47, %v1182_v22 }
 0x53f   :  { %284 = vrot.lane.b32.xlu1 %v998_v48, %s1105_s20 }
 0x540   :  { %v318_v50 = vmul.f32 %v317_v49, %v1188_v24 }
 0x542   :  { %999 = vtanh.f32 %v318_v50 }
 0x548   :  { %v1000_v51 = vpop.eup %999 }
 0x549   :  { %v320_v52 = vmul.f32 %v1000_v51, %v1188_v24 }
 0x54b   :  { %v321_v53 = vadd.f32 %v320_v52, %v1208_v30 }
 0x54d   :  { %342 = vrot.lane.b32.xlu2 %v321_v53, %s1104_s0  ;;  %327 = vrot.lane.b32.xlu1 %v321_v53, %s1105_s20  ;;  %v325_v61 = vmul.f32 %v323_v60, %v321_v53 }
 0x5a7   :  { %v343_v59 = vpop.permute.xlu2 %342 }
 0x5b1   :  { %v285_v54 = vpop.permute.xlu1 %284 }
 0x5b2   :  { %v287_v55 = vmul.f32 %v285_v54, %v270_v38 }
 0x5b4   :  { %v346_v56 = vrot.slane %v287_v55, 6 }
 0x5b6   :  { %347 = vrot.lane.b32.xlu0 %v346_v56, %s1106_s21 }
 0x5bf   :  { %v328_v57 = vpop.permute.xlu1 %327 }
 0x5c0   :  { %v330_v58 = vmul.f32 %v328_v57, %v321_v53 }
 0x5c2   :  { %332 = vrot.lane.b32.xlu2 %v330_v58, %s1105_s20 }
 0x61c   :  { %v333_v62 = vpop.permute.xlu2 %332 }
 0x61d   :  { %v335_v63 = vadd.f32 %v333_v62, %v325_v61 }
 0x61f   :  { %1001 = vtanh.f32 %v335_v63  ;;  %v431_v44 = vrot.slane %v335_v63, 7 }
 0x625   :  { %v1002_v0 = vpop.eup %1001 }
 0x626   :  { %338 = vrot.lane.b32.xlu0 %v1002_v0, %s1105_s20 }
 0x628   :  { %v348_v1 = vpop.permute.xlu0 %347 }
 0x629   :  { %v350_v4 = vsel %vm63_vm0, %v343_v59, %v348_v1 }
 0x62a   :  { %v352_v6 = vrot.slane %v350_v4, 2 }
 0x62c   :  { %962 = vmatmul.msk.f32.vlgmr.msrb.gmra.mxu3 %vm136_vm4, %v352_v6 }
 0x62d   :  { %795 = vmatpush.msrb.mxu3 %v1159_v13 }
 0x62f   :  { %796 = vmatpush.msrb.mxu3 %v1161_v14 }
 0x631   :  { %797 = vmatpush.msrb.mxu3 %v1165_v15 }
 0x633   :  { %798 = vmatpush.msrb.mxu3 %v1170_v17 }
 0x635   :  { %799 = vmatpush.msrb.mxu3 %v1179_v21 }
 0x637   :  { %800 = vmatpush.msrb.mxu3 %v1190_v25 }
 0x639   :  { %801 = vmatpush.msrb.mxu3 %v1196_v27 }
 0x63b   :  { %802 = vmatpush.msrb.mxu3 %v1214_v33 }
 0x698   :  { %v339_v8 = vpop.permute.xlu0 %338 }
 0x699   :  { %v341_v9 = vmul.f32 %v339_v8, %v321_v53 }
 0x69b   :  { %v397_v10 = vrot.slane %v341_v9, 2 }
 0x69d   :  { %398 = vrot.lane.b32.xlu1 %v397_v10, %s1104_s0 }
 0x6af   :  { %v372_v11 = vpop.f32.mrf.mxu3 }
 0x6b0   :  { %v373_v12 = vadd.f32 %v372_v11, %v1239_v42 }
 0x6b2   :  { %v375_v16 = vmul.f32 %v373_v12, %v1188_v24 }
 0x6b4   :  { %1003 = vtanh.f32 %v375_v16 }
 0x6ba   :  { %v1004_v18 = vpop.eup %1003 }
 0x6bb   :  { %v377_v19 = vmul.f32 %v1004_v18, %v1188_v24 }
 0x6bd   :  { %v378_v20 = vadd.f32 %v377_v19, %v1208_v30 }
 0x6bf   :  { %381 = vrot.lane.b32.xlu2 %v378_v20, %s1105_s20  ;;  %v379_v31 = vmul.f32 %v378_v20, %v1296_v45 }
 0x70f   :  { %v399_v23 = vpop.permute.xlu1 %398 }
 0x710   :  { %963 = vmatmul.msk.f32.vlgmr.msra.gmra.mxu1 %vm63_vm0, %v399_v23 }
 0x711   :  { %846 = vmatpush.msra.mxu1 %v1131_v2 }
 0x713   :  { %847 = vmatpush.msra.mxu1 %v1134_v3 }
 0x715   :  { %848 = vmatpush.msra.mxu1 %v1136_v5 }
 0x717   :  { %849 = vmatpush.msra.mxu1 %v1140_v7 }
 0x719   :  { %v382_v26 = vpop.permute.xlu2 %381 }
 0x71a   :  { %v384_v28 = vmul.f32 %v382_v26, %v378_v20 }
 0x71c   :  { %386 = vrot.lane.b32.xlu0 %v384_v28, %s1105_s20 }
 0x78d   :  { %v419_v29 = vpop.f32.mrf.mxu1 }
 0x78e   :  { %v423_v32 = vrot.slane %v419_v29, 5  ;;  %v387_v34 = vpop.permute.xlu0 %386 }
 0x78f   :  { %v1333_v35 = vadd.f32 %v387_v34, %v379_v31 }
 0x790   :  { %v425_v36 = vadd.f32 %v423_v32, %v1182_v22 }
 0x791   :  { %1005 = vtanh.f32 %v1333_v35 }
 0x792   :  { %v426_v2 = vmul.f32 %v425_v36, %v1188_v24 }
 0x794   :  { %1007 = vtanh.f32 %v426_v2 }
 0x797   :  { %v1006_v3 = vpop.eup %1005 }
 0x798   :  { %392 = vrot.lane.b32.xlu1 %v1006_v3, %s1105_s20 }
 0x79a   :  { %v1008_v5 = vpop.eup %1007 }
 0x79b   :  { %v428_v7 = vmul.f32 %v1008_v5, %v1188_v24 }
 0x79d   :  { %v429_v37 = vadd.f32 %v428_v7, %v1208_v30 }
 0x79f   :  { %435 = vrot.lane.b32.xlu2 %v429_v37, %s1105_s20  ;;  %450 = vrot.lane.b32.xlu0 %v429_v37, %s1104_s0  ;;  %v433_v45 = vmul.f32 %v431_v44, %v429_v37 }
 0x7f9   :  { %v436_v38 = vpop.permute.xlu2 %435 }
 0x7fa   :  { %v438_v39 = vmul.f32 %v436_v38, %v429_v37 }
 0x7fc   :  { %440 = vrot.lane.b32.xlu2 %v438_v39, %s1105_s20 }
 0x80a   :  { %v393_v40 = vpop.permute.xlu1 %392 }
 0x80b   :  { %v395_v41 = vmul.f32 %v393_v40, %v378_v20 }
 0x80d   :  { %v454_v43 = vrot.slane %v395_v41, 5 }
 0x80f   :  { %455 = vrot.lane.b32.xlu1 %v454_v43, %s1106_s21 }
 0x811   :  { %v451_v49 = vpop.permute.xlu0 %450 }
 0x856   :  { %v441_v46 = vpop.permute.xlu2 %440 }
 0x857   :  { %v443_v47 = vadd.f32 %v441_v46, %v433_v45 }
 0x859   :  { %1009 = vtanh.f32 %v443_v47  ;;  %v539_v16 = vrot.slane %v443_v47, 7 }
 0x85f   :  { %v1010_v48 = vpop.eup %1009 }
 0x860   :  { %446 = vrot.lane.b32.xlu0 %v1010_v48, %s1105_s20 }
 0x881   :  { %v456_v50 = vpop.permute.xlu1 %455 }
 0x882   :  { %v458_v51 = vsel %vm63_vm0, %v451_v49, %v456_v50 }
 0x883   :  { %v460_v52 = vrot.slane %v458_v51, 3 }
 0x885   :  { %964 = vmatmul.msk.f32.vlgmr.msrb.gmra.mxu2 %vm136_vm4, %v460_v52 }
 0x886   :  { %884 = vmatpush.msrb.mxu2 %v1159_v13 }
 0x888   :  { %885 = vmatpush.msrb.mxu2 %v1161_v14 }
 0x88a   :  { %886 = vmatpush.msrb.mxu2 %v1165_v15 }
 0x88c   :  { %887 = vmatpush.msrb.mxu2 %v1170_v17 }
 0x88e   :  { %888 = vmatpush.msrb.mxu2 %v1179_v21 }
 0x890   :  { %889 = vmatpush.msrb.mxu2 %v1190_v25 }
 0x892   :  { %890 = vmatpush.msrb.mxu2 %v1196_v27 }
 0x894   :  { %891 = vmatpush.msrb.mxu2 %v1214_v33 }
 0x8d2   :  { %v447_v53 = vpop.permute.xlu0 %446 }
 0x8d3   :  { %v449_v54 = vmul.f32 %v447_v53, %v429_v37 }
 0x8d5   :  { %v505_v55 = vrot.slane %v449_v54, 3 }
 0x8d7   :  { %506 = vrot.lane.b32.xlu1 %v505_v55, %s1104_s0 }
 0x908   :  { %v480_v13 = vpop.f32.mrf.mxu2 }
 0x909   :  { %v481_v14 = vadd.f32 %v480_v13, %v1239_v42 }
 0x90b   :  { %v483_v15 = vmul.f32 %v481_v14, %v1188_v24 }
 0x90d   :  { %1011 = vtanh.f32 %v483_v15 }
 0x913   :  { %v1012_v17 = vpop.eup %1011 }
 0x914   :  { %v485_v21 = vmul.f32 %v1012_v17, %v1188_v24 }
 0x916   :  { %v486_v25 = vadd.f32 %v485_v21, %v1208_v30 }
 0x918   :  { %489 = vrot.lane.b32.xlu2 %v486_v25, %s1105_s20  ;;  %v487_v0 = vmul.f32 %v486_v25, %v1333_v35 }
 0x949   :  { %v507_v27 = vpop.permute.xlu1 %506 }
 0x94a   :  { %965 = vmatmul.msk.f32.vlgmr.msra.gmra.mxu0 %vm63_vm0, %v507_v27 }
 0x972   :  { %v490_v33 = vpop.permute.xlu2 %489 }
 0x973   :  { %v492_v56 = vmul.f32 %v490_v33, %v486_v25 }
 0x975   :  { %494 = vrot.lane.b32.xlu0 %v492_v56, %s1105_s20 }
 0x9c7   :  { %v527_v57 = vpop.f32.mrf.mxu0 }
 0x9c8   :  { %v531_v58 = vrot.slane %v527_v57, 4 }
 0x9ca   :  { %v533_v59 = vadd.f32 %v531_v58, %v1182_v22 }
 0x9cc   :  { %v534_v60 = vmul.f32 %v533_v59, %v1188_v24 }
 0x9ce   :  { %1013 = vtanh.f32 %v534_v60 }
 0x9d4   :  { %v1014_v61 = vpop.eup %1013 }
 0x9d5   :  { %v536_v62 = vmul.f32 %v1014_v61, %v1188_v24 }
 0x9d7   :  { %v537_v63 = vadd.f32 %v536_v62, %v1208_v30 }
 0x9d9   :  { %543 = vrot.lane.b32.xlu2 %v537_v63, %s1105_s20  ;;  %558 = vrot.lane.b32.xlu0 %v537_v63, %s1104_s0  ;;  %v541_v18 = vmul.f32 %v539_v16, %v537_v63 }
 0x9e7   :  { %v495_v1 = vpop.permute.xlu0 %494 }
 0x9e8   :  { %v497_v4 = vadd.f32 %v495_v1, %v487_v0 }
 0x9ea   :  { %1015 = vtanh.f32 %v497_v4 }
 0x9f0   :  { %v1016_v6 = vpop.eup %1015 }
 0x9f1   :  { %500 = vrot.lane.b32.xlu1 %v1016_v6, %s1105_s20 }
 0xa33   :  { %v544_v8 = vpop.permute.xlu2 %543 }
 0xa34   :  { %v546_v9 = vmul.f32 %v544_v8, %v537_v63 }
 0xa36   :  { %548 = vrot.lane.b32.xlu2 %v546_v9, %s1105_s20 }
 0xa4b   :  { %v559_v26 = vpop.permute.xlu0 %558 }
 0xa63   :  { %v501_v10 = vpop.permute.xlu1 %500 }
 0xa64   :  { %v503_v11 = vmul.f32 %v501_v10, %v486_v25 }
 0xa66   :  { %v562_v12 = vrot.slane %v503_v11, 4 }
 0xa68   :  { %563 = vrot.lane.b32.xlu1 %v562_v12, %s1106_s21 }
 0xa90   :  { %v549_v19 = vpop.permute.xlu2 %548 }
 0xa91   :  { %v551_v20 = vadd.f32 %v549_v19, %v541_v18 }
 0xa93   :  { %1017 = vtanh.f32 %v551_v20  ;;  %v647_v15 = vrot.slane %v551_v20, 7 }
 0xa99   :  { %v1018_v23 = vpop.eup %1017 }
 0xa9a   :  { %554 = vrot.lane.b32.xlu0 %v1018_v23, %s1105_s20 }
 0xada   :  { %v564_v28 = vpop.permute.xlu1 %563 }
 0xadb   :  { %v566_v29 = vsel %vm63_vm0, %v559_v26, %v564_v28 }
 0xadc   :  { %v568_v31 = vrot.slane %v566_v29, 4 }
 0xade   :  { %966 = vmatmul.msk.f32.vlgmr.msrb.gmra.mxu1 %vm136_vm4, %v568_v31 }
 0xb0c   :  { %v555_v32 = vpop.permute.xlu0 %554 }
 0xb0d   :  { %v557_v34 = vmul.f32 %v555_v32, %v537_v63 }
 0xb0f   :  { %v613_v35 = vrot.slane %v557_v34, 4 }
 0xb11   :  { %614 = vrot.lane.b32.xlu1 %v613_v35, %s1104_s0 }
 0xb5b   :  { %v588_v36 = vpop.f32.mrf.mxu1 }
 0xb5c   :  { %v589_v2 = vadd.f32 %v588_v36, %v1239_v42 }
 0xb5e   :  { %v591_v3 = vmul.f32 %v589_v2, %v1188_v24 }
 0xb60   :  { %1019 = vtanh.f32 %v591_v3 }
 0xb66   :  { %v1020_v5 = vpop.eup %1019 }
 0xb67   :  { %v593_v7 = vmul.f32 %v1020_v5, %v1188_v24 }
 0xb69   :  { %v594_v37 = vadd.f32 %v593_v7, %v1208_v30 }
 0xb6b   :  { %597 = vrot.lane.b32.xlu2 %v594_v37, %s1105_s20  ;;  %v595_v49 = vmul.f32 %v594_v37, %v497_v4 }
 0xb83   :  { %v615_v38 = vpop.permute.xlu1 %614 }
 0xb84   :  { %967 = vmatmul.msk.f32.vlgmr.msra.gmra.mxu3 %vm63_vm0, %v615_v38 }
 0xbc5   :  { %v598_v39 = vpop.permute.xlu2 %597 }
 0xbc6   :  { %v600_v40 = vmul.f32 %v598_v39, %v594_v37 }
 0xbc8   :  { %602 = vrot.lane.b32.xlu0 %v600_v40, %s1105_s20 }
 0xc07   :  { %v635_v41 = vpop.f32.mrf.mxu3 }
 0xc08   :  { %v639_v43 = vrot.slane %v635_v41, 3 }
 0xc0a   :  { %v641_v44 = vadd.f32 %v639_v43, %v1182_v22 }
 0xc0c   :  { %v642_v45 = vmul.f32 %v641_v44, %v1188_v24 }
 0xc0e   :  { %1021 = vtanh.f32 %v642_v45 }
 0xc14   :  { %v1022_v46 = vpop.eup %1021 }
 0xc15   :  { %v644_v47 = vmul.f32 %v1022_v46, %v1188_v24 }
 0xc17   :  { %v645_v48 = vadd.f32 %v644_v47, %v1208_v30 }
 0xc19   :  { %651 = vrot.lane.b32.xlu2 %v645_v48, %s1105_s20  ;;  %666 = vrot.lane.b32.xlu0 %v645_v48, %s1104_s0  ;;  %v649_v17 = vmul.f32 %v647_v15, %v645_v48 }
 0xc3a   :  { %v603_v50 = vpop.permute.xlu0 %602 }
 0xc3b   :  { %v605_v51 = vadd.f32 %v603_v50, %v595_v49 }
 0xc3d   :  { %1023 = vtanh.f32 %v605_v51 }
 0xc43   :  { %v1024_v52 = vpop.eup %1023 }
 0xc44   :  { %608 = vrot.lane.b32.xlu1 %v1024_v52, %s1105_s20 }
 0xc73   :  { %v652_v53 = vpop.permute.xlu2 %651 }
 0xc74   :  { %v654_v54 = vmul.f32 %v652_v53, %v645_v48 }
 0xc76   :  { %656 = vrot.lane.b32.xlu2 %v654_v54, %s1105_s20 }
 0xc8b   :  { %v667_v33 = vpop.permute.xlu0 %666 }
 0xcb6   :  { %v609_v55 = vpop.permute.xlu1 %608 }
 0xcb7   :  { %v611_v13 = vmul.f32 %v609_v55, %v594_v37 }
 0xcb9   :  { %v670_v14 = vrot.slane %v611_v13, 3 }
 0xcbb   :  { %671 = vrot.lane.b32.xlu1 %v670_v14, %s1106_s21 }
 0xcd0   :  { %v657_v21 = vpop.permute.xlu2 %656 }
 0xcd1   :  { %v659_v25 = vadd.f32 %v657_v21, %v649_v17 }
 0xcd3   :  { %1025 = vtanh.f32 %v659_v25  ;;  %v755_v5 = vrot.slane %v659_v25, 7 }
 0xcd9   :  { %v1026_v27 = vpop.eup %1025 }
 0xcda   :  { %662 = vrot.lane.b32.xlu0 %v1026_v27, %s1105_s20 }
 0xd2d   :  { %v672_v56 = vpop.permute.xlu1 %671 }
 0xd2e   :  { %v674_v57 = vsel %vm63_vm0, %v667_v33, %v672_v56 }
 0xd2f   :  { %v676_v58 = vrot.slane %v674_v57, 5 }
 0xd31   :  { %968 = vmatmul.msk.f32.vlgmr.msrb.gmra.mxu0 %vm136_vm4, %v676_v58 }
 0xd4c   :  { %v663_v59 = vpop.permute.xlu0 %662 }
 0xd4d   :  { %v665_v60 = vmul.f32 %v663_v59, %v645_v48 }
 0xd4f   :  { %v721_v61 = vrot.slane %v665_v60, 5 }
 0xd51   :  { %722 = vrot.lane.b32.xlu1 %v721_v61, %s1104_s0 }
 0xdae   :  { %v696_v62 = vpop.f32.mrf.mxu0 }
 0xdaf   :  { %v697_v63 = vadd.f32 %v696_v62, %v1239_v42 }
 0xdb1   :  { %v699_v0 = vmul.f32 %v697_v63, %v1188_v24 }
 0xdb3   :  { %1027 = vtanh.f32 %v699_v0 }
 0xdb9   :  { %v1028_v1 = vpop.eup %1027 }
 0xdba   :  { %v701_v4 = vmul.f32 %v1028_v1, %v1188_v24  ;;  %v52_v1 = vld [vmem:[%s1463_s2 + $0x18] sm:$0xff] }
 0xdbb   :  { %917 = vmatpush.msra.mxu0 %v52_v1 }
 0xdbc   :  { %v702_v6 = vadd.f32 %v701_v4, %v1208_v30  ;;  %v51_v4 = vld [vmem:[%s1463_s2 + $0x10] sm:$0xff] }
 0xdbd   :  { %918 = vmatpush.msra.mxu0 %v51_v4 }
 0xdbe   :  { %705 = vrot.lane.b32.xlu2 %v702_v6, %s1105_s20  ;;  %v703_v26 = vmul.f32 %v702_v6, %v605_v51 }
 0xdc3   :  { %v723_v8 = vpop.permute.xlu1 %722 }
 0xdc4   :  { %969 = vmatmul.msk.f32.vlgmr.msra.gmra.mxu2 %vm63_vm0, %v723_v8  ;;  %v49_v8 = vld [vmem:[%s1463_s2] sm:$0xff] }
 0xe18   :  { %v706_v9 = vpop.permute.xlu2 %705 }
 0xe19   :  { %v708_v10 = vmul.f32 %v706_v9, %v702_v6 }
 0xe1b   :  { %710 = vrot.lane.b32.xlu0 %v708_v10, %s1105_s20 }
 0xe47   :  { %v743_v11 = vpop.f32.mrf.mxu2 }
 0xe48   :  { %v747_v12 = vrot.slane %v743_v11, 2 }
 0xe4a   :  { %v749_v16 = vadd.f32 %v747_v12, %v1182_v22 }
 0xe4c   :  { %v750_v18 = vmul.f32 %v749_v16, %v1188_v24 }
 0xe4e   :  { %1029 = vtanh.f32 %v750_v18 }
 0xe54   :  { %v1030_v19 = vpop.eup %1029 }
 0xe55   :  { %v752_v20 = vmul.f32 %v1030_v19, %v1188_v24 }
 0xe57   :  { %v753_v23 = vadd.f32 %v752_v20, %v1208_v30  ;;  %v53_v20 = vld [vmem:[%s1463_s2 + $0x20] sm:$0xff] }
 0xe59   :  { %774 = vrot.lane.b32.xlu2 %v753_v23, %s1104_s0  ;;  %v757_v7 = vmul.f32 %v755_v5, %v753_v23 }
 0xe8d   :  { %v711_v28 = vpop.permute.xlu0 %710 }
 0xe8e   :  { %v713_v29 = vadd.f32 %v711_v28, %v703_v26 }
 0xe90   :  { %1031 = vtanh.f32 %v713_v29 }
 0xe96   :  { %v1032_v31 = vpop.eup %1031 }
 0xe97   :  { %716 = vrot.lane.b32.xlu1 %v1032_v31, %s1105_s20 }
 0xe9f   :  { %759 = vrot.lane.b32.xlu1 %v753_v23, %s1105_s20 }
 0xeb3   :  { %v775_v3 = vpop.permute.xlu2 %774 }
 0xf09   :  { %v717_v32 = vpop.permute.xlu1 %716 }
 0xf0a   :  { %v719_v34 = vmul.f32 %v717_v32, %v702_v6  ;;  %v50_v6 = vld [vmem:[%s1463_s2 + $0x8] sm:$0xff]  ;;  %s945_s2 = sshll.u32 %s1107_s5, 4  ;;  %s946_s2 = int_to_ptr.vmem [resolvable:$true] %s945_s2 }
 0xf0b   :  { %919 = vmatpush.msra.mxu0 %v50_v6 }
 0xf0c   :  { %v778_v35 = vrot.slane %v719_v34, 2 }
 0xf0d   :  { %920 = vmatpush.msra.mxu0 %v49_v8 }
 0xf0e   :  { %779 = vrot.lane.b32.xlu0 %v778_v35, %s1106_s21 }
 0xf11   :  { %v760_v36 = vpop.permute.xlu1 %759 }
 0xf12   :  { %v762_v2 = vmul.f32 %v760_v36, %v753_v23 }
 0xf14   :  { %764 = vrot.lane.b32.xlu2 %v762_v2, %s1105_s20 }
 0xf6e   :  { %v765_v37 = vpop.permute.xlu2 %764 }
 0xf6f   :  { %v767_v38 = vadd.f32 %v765_v37, %v757_v7 }
 0xf71   :  { %1033 = vtanh.f32 %v767_v38 }
 0xf77   :  { %v1034_v39 = vpop.eup %1033 }
 0xf78   :  { %770 = vrot.lane.b32.xlu0 %v1034_v39, %s1105_s20 }
 0xf80   :  { %v780_v40 = vpop.permute.xlu0 %779 }
 0xf81   :  { %v782_v41 = vsel %vm63_vm0, %v775_v3, %v780_v40 }
 0xf82   :  { %v784_v43 = vrot.slane %v782_v41, 6 }
 0xf84   :  { %970 = vmatmul.msk.f32.vlgmr.msrb.gmra.mxu3 %vm136_vm4, %v784_v43 }
 0xfea   :  { %v771_v44 = vpop.permute.xlu0 %770 }
 0xfeb   :  { %v773_v45 = vmul.f32 %v771_v44, %v753_v23 }
 0xfed   :  { %v829_v46 = vrot.slane %v773_v45, 6 }
 0xfef   :  { %830 = vrot.lane.b32.xlu1 %v829_v46, %s1104_s0 }
0x1007   :  { %v804_v47 = vpop.f32.mrf.mxu3 }
0x1008   :  { %v805_v48 = vadd.f32 %v804_v47, %v1239_v42 }
0x100a   :  { %v807_v49 = vmul.f32 %v805_v48, %v1188_v24 }
0x100c   :  { %1035 = vtanh.f32 %v807_v49 }
0x1012   :  { %v1036_v50 = vpop.eup %1035 }
0x1013   :  { %v809_v51 = vmul.f32 %v1036_v50, %v1188_v24 }
0x1015   :  { %v810_v52 = vadd.f32 %v809_v51, %v1208_v30 }
0x1017   :  { %813 = vrot.lane.b32.xlu2 %v810_v52, %s1105_s20  ;;  %v811_v21 = vmul.f32 %v810_v52, %v713_v29 }
0x1061   :  { %v831_v53 = vpop.permute.xlu1 %830 }
0x1062   :  { %971 = vmatmul.msk.f32.vlgmr.msra.gmra.mxu1 %vm63_vm0, %v831_v53 }
0x1071   :  { %v814_v54 = vpop.permute.xlu2 %813 }
0x1072   :  { %v816_v55 = vmul.f32 %v814_v54, %v810_v52 }
0x1074   :  { %818 = vrot.lane.b32.xlu0 %v816_v55, %s1105_s20 }
0x10df   :  { %v851_v13 = vpop.f32.mrf.mxu1 }
0x10e0   :  { %v855_v14 = vrot.slane %v851_v13, 1 }
0x10e2   :  { %v857_v15 = vadd.f32 %v855_v14, %v1182_v22 }
0x10e4   :  { %v858_v17 = vmul.f32 %v857_v15, %v1188_v24 }
0x10e6   :  { %1037 = vtanh.f32 %v858_v17  ;;  %v819_v25 = vpop.permute.xlu0 %818 }
0x10e7   :  { %v821_v27 = vadd.f32 %v819_v25, %v811_v21 }
0x10e9   :  { %1039 = vtanh.f32 %v821_v27 }
0x10ec   :  { %v1038_v33 = vpop.eup %1037 }
0x10ed   :  { %v860_v56 = vmul.f32 %v1038_v33, %v1188_v24 }
0x10ef   :  { %v1040_v57 = vpop.eup %1039  ;;  %v861_v58 = vadd.f32 %v860_v56, %v1208_v30 }
0x10f0   :  { %824 = vrot.lane.b32.xlu1 %v1040_v57, %s1105_s20 }
0x10f1   :  { %863 = vrot.lane.b32.xlu2 %v861_v58, %s1104_s0 }
0x114b   :  { %v864_v61 = vpop.permute.xlu2 %863 }
0x1162   :  { %v825_v59 = vpop.permute.xlu1 %824 }
0x1163   :  { %v827_v60 = vmul.f32 %v825_v59, %v810_v52 }
0x1165   :  { %v867_v22 = vrot.slane %v827_v60, 1 }
0x1167   :  { %868 = vrot.lane.b32.xlu0 %v867_v22, %s1106_s21 }
0x11d9   :  { %v869_v62 = vpop.permute.xlu0 %868 }
0x11da   :  { %v871_v63 = vsel %vm63_vm0, %v864_v61, %v869_v62 }
0x11db   :  { %v873_v0 = vrot.slane %v871_v63, 7 }
0x11dd   :  { %972 = vmatmul.msk.f32.vlgmr.msrb.gmra.mxu2 %vm136_vm4, %v873_v0 }
0x1260   :  { %v893_v9 = vpop.f32.mrf.mxu2 }
0x1261   :  { %v894_v10 = vadd.f32 %v893_v9, %v1239_v42 }
0x1263   :  { %v896_v11 = vmul.f32 %v894_v10, %v1188_v24 }
0x1265   :  { %1041 = vtanh.f32 %v896_v11 }
0x126b   :  { %v1042_v12 = vpop.eup %1041 }
0x126c   :  { %v898_v16 = vmul.f32 %v1042_v12, %v1188_v24 }
0x126e   :  { %v899_v18 = vadd.f32 %v898_v16, %v1208_v30 }
0x1270   :  { %901 = vrot.lane.b32.xlu1 %v899_v18, %s1104_s0 }
0x12e2   :  { %v902_v19 = vpop.permute.xlu1 %901 }
0x12e3   :  { %973 = vmatmul.msk.f32.vlgmr.msra.gmra.mxu0 %vm63_vm0, %v902_v19 }
0x1360   :  { %v922_v23 = vpop.f32.mrf.mxu0 }
0x1361   :  { %v923_v42 = vadd.f32 %v922_v23, %v53_v20 }
0x1363   :  { %v926_v26 = vsel %vm925_vm5, %v923_v42, -inf }
0x1364   :  { %927 = vmax.xlane.f32.xlu2 %v926_v26 }
0x13d7   :  { %v928_v28 = vpop.xlane.xlu2 %927 }
0x13d8   :  { %v929_v29 = vsub.f32 %v923_v42, %v928_v28 }
0x13da   :  { %v930_v24 = vmul.f32 1.442695, %v929_v29 }
0x13dc   :  { %1043 = vpow2.f32 %v930_v24 }
0x13e2   :  { %v1044_v30 = vpop.eup %1043 }
0x13e3   :  { %v932_v31 = vsel %vm925_vm5, %v1044_v30, 0.0 }
0x13e4   :  { %933 = vadd.xlane.f32.xlu0 %v932_v31 }
0x1457   :  { %v934_v32 = vpop.xlane.xlu0 %933 }
0x1458   :  { %1045 = vlog2.f32 %v934_v32 }
0x145e   :  { %v1046_v34 = vpop.eup %1045 }
0x145f   :  { %v936_v35 = vmul.f32 0.6931472, %v1046_v34 }
0x1461   :  { %v937_v36 = vadd.f32 %v936_v35, %v928_v28 }
0x1463   :  { %v938_v2 = vsub.f32 %v923_v42, %v937_v36 }
0x1465   :  { %939 = vst.msk [vmem:[#allocation5] sm:$0x1] %vm925_vm5, %v938_v2 }
0x1466   :  { %950 = dma.vmem_to_hbm [thread:$0]  %s946_s2, 16, %s948_s8, [#allocation4]  }
0x1467   :  { %1097 = dma.done.wait [#allocation4], 16  }
0x1468   :  { %1098 = vsyncadd [#allocation4], 4294967280 }
0x1469   :  { %955 = vsyncpa [#allocation3], 1 }
0x146a   :  { %956 = vsyncpa [#allocation4], 1 }

</bundles_post_ra>
